<compile_context>
chip_gen: v5e
topology: v5e:2x2
jax: 0.10.0
libtpu: 0.0.40
codegen_flags: <defaults>
</compile_context>

<pallas_src>
import jax
import jax.numpy as jnp
from jax import lax
from jax.experimental import pallas as pl
from jax.experimental.pallas import tpu as pltpu

BN_EPS = 1e-5


# ----------------------------------------------------------------------------
# Kernel 1: conv1 (3x3, stride 1) as one banded matmul per image, producing the
# row-pair packed activation + per-lane-column BN partial statistics.
# ----------------------------------------------------------------------------
def conv1_stats_kernel(xq_ref, w_ref, y_ref, stats_ref):
    # xq_ref   : (B_TILE, H/2, K1p)        bf16 packed padded row-quads
    # w_ref    : (K1p, 2*W*Cout)           bf16 banded conv1 weight
    # y_ref    : (B_TILE, H/2, 2*W*Cout)   bf16 conv1 output, row-pair packed (lane-dense)
    # stats_ref: (1, 3, 2*W*Cout)          f32  [sum, centered ssq, n*mean^2] per lane column
    bt, hp, _ = xq_ref.shape
    L = y_ref.shape[-1]

    s_sum = jnp.zeros((1, L), jnp.float32)
    s_ssq = jnp.zeros((1, L), jnp.float32)
    s_nm2 = jnp.zeros((1, L), jnp.float32)
    for b in range(bt):                                   # static, small B_TILE
        acc = jnp.dot(xq_ref[b], w_ref[...],
                      preferred_element_type=jnp.float32)  # (H/2, 2*W*Cout) f32
        y_ref[b] = acc.astype(y_ref.dtype)                 # lane-dense store, no relayout
        csum = jnp.sum(acc, axis=0, keepdims=True)
        cmean = csum * (1.0 / hp)
        d = acc - cmean
        s_sum = s_sum + csum
        s_ssq = s_ssq + jnp.sum(d * d, axis=0, keepdims=True)
        s_nm2 = s_nm2 + hp * cmean * cmean
    stats_ref[0] = jnp.concatenate([s_sum, s_ssq, s_nm2], axis=0)


# ----------------------------------------------------------------------------
# Kernel 2: fused BN(scale/shift, bf16) + ReLU + conv2 (3x3, stride 2) as two
# matmuls per image in the row-pair packed layout.  No scratch, no strided reads.
# ----------------------------------------------------------------------------
def bn_relu_conv2_kernel(y_ref, sc_ref, sh_ref, wa_ref, wb_ref, o_ref):
    # y_ref : (B_TILE, H/2, 2*W*C) bf16   row-pair packed conv1 output
    # sc/sh : (1, 2*W*C) bf16            BN scale/shift tiled to the packed lanes
    # wa_ref: (2*W*C, Wo*Cout) bf16      bands kh=1 (even rows) & kh=2 (odd rows)
    # wb_ref: (W*C,   Wo*Cout) bf16      band  kh=0 (previous pair's odd row)
    # o_ref : (B_TILE, H/2, Wo*Cout) f32 conv2 output (Ho = H/2 rows)
    bt, hp, _ = y_ref.shape
    wc = wb_ref.shape[0]                                   # W*C  (one parity half)
    for b in range(bt):
        z = jnp.maximum(y_ref[b] * sc_ref[...] + sh_ref[...], 0.0)   # bf16 BN + ReLU
        z_odd = z[:, wc:]                                  # odd input rows (contiguous lanes)
        z_odd_up = jnp.concatenate(
            [jnp.zeros((1, wc), z.dtype), z_odd[:hp - 1, :]], axis=0)  # row -1 is zero pad
        acc = jnp.dot(z, wa_ref[...], preferred_element_type=jnp.float32)
        acc = acc + jnp.dot(z_odd_up, wb_ref[...], preferred_element_type=jnp.float32)
        o_ref[b] = acc


# ----------------------------------------------------------------------------
# Wrapper-side (XLA) prep of packed inputs and banded weights — tiny one-time work.
# ----------------------------------------------------------------------------
def _build_input_quads(x_nhwc):
    n, h, w, cin = x_nhwc.shape
    xp = jnp.pad(x_nhwc, ((0, 0), (1, 1), (1, 1), (0, 0)))            # (N, H+2, W+2, Cin)
    rows = [xp[:, r:r + h - 1:2] for r in range(4)]                    # each (N, H/2, W+2, Cin)
    quads = jnp.stack(rows, axis=2)                                    # (N, H/2, 4, W+2, Cin)
    return quads.reshape(n, h // 2, 4 * (w + 2) * cin)


def _build_conv1_weight_banded(w1, w):
    cout, cin = w1.shape[0], w1.shape[1]
    w1_t = jnp.transpose(w1, (2, 3, 1, 0)).astype(jnp.float32)         # (kh, kw, Cin, Cout)
    r = jnp.arange(4)[:, None, None]
    e = jnp.arange(2)[None, :, None]
    kh = jnp.arange(3)[None, None, :]
    R = (r == e + kh).astype(jnp.float32)                               # (4, 2, 3)
    s = jnp.arange(w + 2)[:, None, None]
    wo = jnp.arange(w)[None, :, None]
    kw = jnp.arange(3)[None, None, :]
    S = (s == wo + kw).astype(jnp.float32)                              # (W+2, W, 3)
    wb = jnp.einsum('reh,swk,hkcf->rscewf', R, S, w1_t)
    return wb.reshape(4 * (w + 2) * cin, 2 * w * cout)


def _build_conv2_weights_banded(w2, w):
    cout, c = w2.shape[0], w2.shape[1]
    wo_n = w // 2
    w2_t = jnp.transpose(w2, (2, 3, 1, 0)).astype(jnp.float32)          # (kh, kw, C, Cout)
    wi = jnp.arange(w)[:, None, None]
    wo = jnp.arange(wo_n)[None, :, None]
    kw = jnp.arange(3)[None, None, :]
    T = (wi == 2 * wo + kw - 1).astype(jnp.float32)                     # (W, Wo, 3); pads folded in

    def band(k):
        return jnp.einsum('iok,kcf->icof', T, w2_t[k]).reshape(w * c, wo_n * cout)

    A = jnp.concatenate([band(1), band(2)], axis=0)                     # (2*W*C, Wo*Cout)
    B = band(0)                                                         # (W*C,   Wo*Cout)
    return A, B


def basic_block_forward(x_nchw, params, stride=1):
    """Pallas BasicBlock forward: NCHW in -> NCHW out (matches the PyTorch module)."""
    assert stride == 1, "kernel currently implements stride=1 (conv2 stride 2)"
    w1, gamma, beta, w2 = params
    x = jnp.transpose(x_nchw, (0, 2, 3, 1))                              # NHWC
    N, H, W, Cin = x.shape
    Cout = w1.shape[0]
    assert H % 2 == 0 and W % 2 == 0, "row-pair layout needs even H, W"  # TODO(synk): odd sizes
    Hp, Wo = H // 2, W // 2
    L = 2 * W * Cout                                                     # packed lane width of y1
    N2 = Wo * Cout

    # images per grid step (amortize step overhead when N is large; keep >=2 steps)
    B_TILE = 1
    for cand in (8, 4, 2):
        if N % cand == 0 and N // cand >= 2:
            B_TILE = cand
            break
    nblk = N // B_TILE

    xq = _build_input_quads(x).astype(jnp.bfloat16)                      # (N, H/2, K1)
    wb1 = _build_conv1_weight_banded(w1, W).astype(jnp.bfloat16)         # (K1, L)
    K1 = wb1.shape[0]
    K1p = ((K1 + 127) // 128) * 128                                      # MXU-friendly K
    if K1p != K1:
        xq = jnp.pad(xq, ((0, 0), (0, 0), (0, K1p - K1)))
        wb1 = jnp.pad(wb1, ((0, K1p - K1), (0, 0)))
    wA, wB = _build_conv2_weights_banded(w2, W)
    wA = wA.astype(jnp.bfloat16)
    wB = wB.astype(jnp.bfloat16)

    cparams = pltpu.CompilerParams(
        dimension_semantics=("parallel",),
        vmem_limit_bytes=32 * 1024 * 1024,   # tiny working set; sweep higher on v5e/v6e strips
    )

    # ---- pass 1: conv1 + per-column BN partial stats -----------------------
    y1, stats = pl.pallas_call(
        conv1_stats_kernel,
        grid=(nblk,),
        in_specs=[
            pl.BlockSpec((B_TILE, Hp, K1p), lambda i: (i, 0, 0)),
            pl.BlockSpec((K1p, L), lambda i: (0, 0)),
        ],
        out_specs=(
            pl.BlockSpec((B_TILE, Hp, L), lambda i: (i, 0, 0)),
            pl.BlockSpec((1, 3, L), lambda i: (i, 0, 0)),
        ),
        out_shape=(
            jax.ShapeDtypeStruct((N, Hp, L), jnp.bfloat16),
            jax.ShapeDtypeStruct((nblk, 3, L), jnp.float32),
        ),
        compiler_params=cparams,
    )(xq, wb1)

    # ---- BN finalize (tiny; stable chunk-wise variance combine) ------------
    cnt = jnp.float32(N * H * W)
    st = stats.reshape(nblk, 3, 2 * W, Cout).sum(axis=(0, 2))            # (3, Cout)
    mean = st[0] / cnt
    var = jnp.maximum((st[1] + st[2]) / cnt - mean * mean, 0.0)          # biased batch variance
    scale = gamma.astype(jnp.float32) * lax.rsqrt(var + BN_EPS)
    shift = beta.astype(jnp.float32) - mean * scale
    scale_p = jnp.tile(scale, 2 * W).reshape(1, L).astype(jnp.bfloat16)
    shift_p = jnp.tile(shift, 2 * W).reshape(1, L).astype(jnp.bfloat16)

    # ---- pass 2: fused BN + ReLU + conv2 (stride 2) -------------------------
    o = pl.pallas_call(
        bn_relu_conv2_kernel,
        grid=(nblk,),
        in_specs=[
            pl.BlockSpec((B_TILE, Hp, L), lambda i: (i, 0, 0)),
            pl.BlockSpec((1, L), lambda i: (0, 0)),
            pl.BlockSpec((1, L), lambda i: (0, 0)),
            pl.BlockSpec((L, N2), lambda i: (0, 0)),
            pl.BlockSpec((W * Cout, N2), lambda i: (0, 0)),
        ],
        out_specs=pl.BlockSpec((B_TILE, Hp, N2), lambda i: (i, 0, 0)),
        out_shape=jax.ShapeDtypeStruct((N, Hp, N2), jnp.float32),
        compiler_params=cparams,
    )(y1, scale_p, shift_p, wA, wB)

    out = o.reshape(N, Hp, Wo, Cout)
    return jnp.transpose(out, (0, 3, 1, 2))                              # back to NCHW


# ----------------------------------------------------------------------------
# Pure-JAX fp32 reference (correctness check only).
# ----------------------------------------------------------------------------
def reference_forward(x_nchw, params, stride=1):
    w1, gamma, beta, w2 = params
    x = jnp.transpose(x_nchw, (0, 2, 3, 1)).astype(jnp.float32)

    def conv(v, w, s):
        return lax.conv_general_dilated(
            v, jnp.transpose(w, (2, 3, 1, 0)).astype(jnp.float32), (s, s),
            [(1, 1), (1, 1)], dimension_numbers=("NHWC", "HWIO", "NHWC"))

    y = conv(x, w1, stride)
    mean = jnp.mean(y, axis=(0, 1, 2), keepdims=True)
    var = jnp.mean((y - mean) ** 2, axis=(0, 1, 2), keepdims=True)
    y = (y - mean) * lax.rsqrt(var + BN_EPS) * gamma + beta
    y = jnp.maximum(y, 0.0)
    y = conv(y, w2, 2 * stride)
    return jnp.transpose(y, (0, 3, 1, 2))


if __name__ == "__main__":
    key = jax.random.PRNGKey(0)
    k1, k2, k3, k4, kx = jax.random.split(key, 5)

    N, Cin, Cout, H, W = 2, 4, 8, 16, 16
    x = jax.random.normal(kx, (N, Cin, H, W), jnp.float32)
    w1 = 0.1 * jax.random.normal(k1, (Cout, Cin, 3, 3), jnp.float32)
    w2 = 0.1 * jax.random.normal(k2, (Cout, Cout, 3, 3), jnp.float32)
    gamma = 1.0 + 0.1 * jax.random.normal(k3, (Cout,), jnp.float32)
    beta = 0.1 * jax.random.normal(k4, (Cout,), jnp.float32)
    params = (w1, gamma, beta, w2)

    out = jax.block_until_ready(basic_block_forward(x, params, stride=1))
    assert out.shape == (N, Cout, H // 2, W // 2), out.shape

    ref = jax.block_until_ready(reference_forward(x, params, stride=1))
    max_err = float(jnp.max(jnp.abs(out - ref)))
    # bf16 matmul operands / bf16 intermediate vs. a pure-fp32 reference.
    assert max_err < 7.5e-2, f"mismatch vs reference: {max_err}"

    print("KERNEL_OK")
</pallas_src>

<mosaic_0001>
module attributes {stable_mosaic.version = 11 : i64} {
  func.func @conv1_stats_kernel(%arg0: i32, %arg1: memref<1x8x384xbf16, #tpu.memory_space<vmem>>, %arg2: memref<384x256xbf16, #tpu.memory_space<vmem>>, %arg3: memref<1x8x256xbf16, #tpu.memory_space<vmem>>, %arg4: memref<1x3x256xf32, #tpu.memory_space<vmem>>) attributes {dimension_semantics = [#tpu.dimension_semantics<parallel>], iteration_bounds = array<i64: 2>, scalar_prefetch = 0 : i64, scratch_operands = 0 : i64, tpu.core_type = #tpu.core_type<tc>, window_params = [{transform_indices = @transform_0, window_bounds = array<i64: 1, 8, 384>}, {pipeline_mode = #tpu.pipeline_mode<synchronous>, transform_indices = @transform_1, window_bounds = array<i64: 384, 256>}, {transform_indices = @transform_2, window_bounds = array<i64: 1, 8, 256>}, {transform_indices = @transform_3, window_bounds = array<i64: 1, 3, 256>}]} {
    %cst = arith.constant 0.000000e+00 : f32
    %0 = vector.broadcast %cst : f32 to vector<1x256xf32>
    %cst_0 = arith.constant 0.000000e+00 : f32
    %1 = vector.broadcast %cst_0 : f32 to vector<1x256xf32>
    %cst_1 = arith.constant 0.000000e+00 : f32
    %2 = vector.broadcast %cst_1 : f32 to vector<1x256xf32>
    %c0 = arith.constant 0 : index
    %c0_2 = arith.constant 0 : index
    %c0_3 = arith.constant 0 : index
    %3 = vector.load %arg1[%c0, %c0_2, %c0_3] : memref<1x8x384xbf16, #tpu.memory_space<vmem>>, vector<1x8x384xbf16>
    %4 = vector.shape_cast %3 : vector<1x8x384xbf16> to vector<8x384xbf16>
    %c0_4 = arith.constant 0 : index
    %c0_5 = arith.constant 0 : index
    %5 = vector.load %arg2[%c0_4, %c0_5] : memref<384x256xbf16, #tpu.memory_space<vmem>>, vector<384x256xbf16>
    %cst_6 = arith.constant dense<0.000000e+00> : vector<8x256xf32>
    %6 = tpu.matmul %4, %5, %cst_6 {dimension_numbers = #tpu.dot_dimension_numbers<[1], [0], [0], [1], [0, 0, 1, 1], [], []>} : vector<8x384xbf16>, vector<384x256xbf16>, vector<8x256xf32> -> vector<8x256xf32>
    %7 = arith.truncf %6 : vector<8x256xf32> to vector<8x256xbf16>
    %c0_7 = arith.constant 0 : index
    %c0_8 = arith.constant 0 : index
    %c0_9 = arith.constant 0 : index
    %8 = vector.load %arg3[%c0_7, %c0_8, %c0_9] : memref<1x8x256xbf16, #tpu.memory_space<vmem>>, vector<1x8x256xbf16>
    %9 = vector.shape_cast %8 : vector<1x8x256xbf16> to vector<8x256xbf16>
    %10 = vector.shape_cast %7 : vector<8x256xbf16> to vector<1x8x256xbf16>
    tpu.vector_store %arg3[%c0_7, %c0_8, %c0_9], %10 {strides = array<i32>} : memref<1x8x256xbf16, #tpu.memory_space<vmem>>, vector<1x8x256xbf16>,
    %cst_10 = arith.constant dense<0.000000e+00> : vector<256xf32>
    %11 = vector.multi_reduction <add>, %6, %cst_10 [0] : vector<8x256xf32> to vector<256xf32>
    %12 = vector.shape_cast %11 : vector<256xf32> to vector<1x256xf32>
    %cst_11 = arith.constant 1.250000e-01 : f32
    %13 = vector.broadcast %cst_11 : f32 to vector<1x256xf32>
    %14 = arith.mulf %12, %13 : vector<1x256xf32>
    %15 = vector.broadcast %14 : vector<1x256xf32> to vector<8x256xf32>
    %16 = arith.subf %6, %15 : vector<8x256xf32>
    %17 = arith.addf %0, %12 : vector<1x256xf32>
    %18 = arith.mulf %16, %16 : vector<8x256xf32>
    %cst_12 = arith.constant dense<0.000000e+00> : vector<256xf32>
    %19 = vector.multi_reduction <add>, %18, %cst_12 [0] : vector<8x256xf32> to vector<256xf32>
    %20 = vector.shape_cast %19 : vector<256xf32> to vector<1x256xf32>
    %21 = arith.addf %1, %20 : vector<1x256xf32>
    %cst_13 = arith.constant 8.000000e+00 : f32
    %22 = vector.broadcast %cst_13 : f32 to vector<1x256xf32>
    %23 = arith.mulf %22, %14 : vector<1x256xf32>
    %24 = arith.mulf %23, %14 : vector<1x256xf32>
    %25 = arith.addf %2, %24 : vector<1x256xf32>
    %26 = tpu.concatenate %17, %21, %25 in 0 : vector<1x256xf32>, vector<1x256xf32>, vector<1x256xf32> -> vector<3x256xf32>
    %c0_14 = arith.constant 0 : index
    %c0_15 = arith.constant 0 : index
    %c0_16 = arith.constant 0 : index
    %27 = vector.load %arg4[%c0_14, %c0_15, %c0_16] : memref<1x3x256xf32, #tpu.memory_space<vmem>>, vector<1x3x256xf32>
    %28 = vector.shape_cast %27 : vector<1x3x256xf32> to vector<3x256xf32>
    %29 = vector.shape_cast %26 : vector<3x256xf32> to vector<1x3x256xf32>
    tpu.vector_store %arg4[%c0_14, %c0_15, %c0_16], %29 {strides = array<i32>} : memref<1x3x256xf32, #tpu.memory_space<vmem>>, vector<1x3x256xf32>,
    return
  }
  func.func @transform_0(%arg0: i32) -> (i32, i32, i32) {
    %c0_i32 = arith.constant 0 : i32
    %c0_i32_0 = arith.constant 0 : i32
    %c0_i32_1 = arith.constant 0 : i32
    return %arg0, %c0_i32, %c0_i32_0 : i32, i32, i32
  }
  func.func @transform_1(%arg0: i32) -> (i32, i32) {
    %c0_i32 = arith.constant 0 : i32
    %c0_i32_0 = arith.constant 0 : i32
    %c0_i32_1 = arith.constant 0 : i32
    return %c0_i32, %c0_i32_0 : i32, i32
  }
  func.func @transform_2(%arg0: i32) -> (i32, i32, i32) {
    %c0_i32 = arith.constant 0 : i32
    %c0_i32_0 = arith.constant 0 : i32
    %c0_i32_1 = arith.constant 0 : i32
    return %arg0, %c0_i32, %c0_i32_0 : i32, i32, i32
  }
  func.func @transform_3(%arg0: i32) -> (i32, i32, i32) {
    %c0_i32 = arith.constant 0 : i32
    %c0_i32_0 = arith.constant 0 : i32
    %c0_i32_1 = arith.constant 0 : i32
    return %arg0, %c0_i32, %c0_i32_0 : i32, i32, i32
  }
}

</mosaic_0001>

<bundles_post_ra>
// kernel: tpu_custom_call.1
= control target key start
LH: loop header
LB: loop body
LE: loop exit
PB: predicated region body
PF: predicated region fallthrough
CT: control target
= control target key end

     0   :  { %9 = vsyncpa [#allocation3], 0  ;;  %s1420_s0 = inlined_call_operand.hbm [shape: bf16[2,8,384], index: 0, kind: input, shape index: {}]   ;;  %s1421_s1 = inlined_call_operand.hbm [shape: bf16[384,256], index: 1, kind: input, shape index: {}]   ;;  %s1422_s2 = inlined_call_operand.hbm [shape: bf16[2,8,256], index: 2, kind: output, shape index: {0}]   ;;  %s1423_s3 = inlined_call_operand.vmem [shape: f32[2,3,256], index: 3, kind: output, shape index: {1}]  }
   0x1   :  { %11 = vsyncpa [#allocation3 + $0x1], 0 }
   0x2   :  { %12 = vsyncpa [#allocation6], 0 }
   0x3   :  { %13 = vsyncpa [#allocation4], 0 }
   0x4   :  { %15 = vsyncpa [#allocation4 + $0x1], 0  ;;  %s1257_s12 = smov 0   ;;  %s1259_s13 = smov 0  }
   0x5   :  { %s1261_s14 = smov 0   ;;  %s1263_s15 = smov 0  }
   0x6 LB: > { %s136_s18 = sshll.u32 %s1421_s1, 4  ;;  %s1281_s19 = sadd.s32 4294967295, %s1232_s15   ;;  %s1232_s15 = sphi %s1263_s15, %s1433_s15   ;;  %s1228_s14 = sphi %s1261_s14, %s1432_s14   ;;  %s1224_s13 = sphi %s1259_s13, %s1431_s13   ;;  %s1220_s12 = sphi %s1257_s12, %s1430_s12   ;;  %s137_s18 = int_to_ptr.hbm [resolvable:$true] %s136_s18 }
   0x7   : > { %p784_p0 = scmp.ge.s32.totalorder %s1232_s15, 1  ;;  %p42_p1 = scmp.eq.s32.totalorder %s1281_s19, 0 }
   0x8   : > { %p125_p2 = scmp.lt.s32.totalorder %s1232_s15, 3  ;;  %s1234_s21 = smov [#allocation5]  }
   0x9   : > { %s138_s22 = sshll.u32 %s1234_s21, 4  ;;  %s1235_s23 = smov 128   ;;  %s139_s22 = int_to_ptr.vmem [resolvable:$true] %s138_s22 }
   0xa   : > { %p1286_p3 = pnand %p784_p0, %p125_p2  ;;  %s1236_s24 = smov 8  }
   0xb   : > { %s783_s25 = sadd.s32 4294967294, %s1232_s15   ;;  %s1297_s26 = sadd.s32 1, %s1232_s15  }
   0xc   : > { %p1051_p4 = pneg %p1286_p3  ;;  %s28_s27 = sadd.s32 1, %s1228_s14 }
   0xd   : > { %s25_s28 = ssub.s32 %s1232_s15, %s1297_s26  ;;  %p35_p7 = scmp.ne.s32.totalorder %s1228_s14, %s1224_s13 }
   0xe   : > { %p1052_p6 = pnand %p1051_p4, %p42_p1  ;;  %p26_p8 = scmp.eq.s32.totalorder %s25_s28, 0 }
   0xf   : > { %p36_p9 = scmp.eq.s32.totalorder %s1232_s15, 0  ;;  %p41_p10 = scmp.ne.s32.totalorder %s1224_s13, %s1220_s12 }
  0x10   : > { %1054 = dma.hbm_to_vmem [thread:$0]  (!%p1052_p6), %s137_s18, 6144, %s139_s22, [#allocation6], %s1235_s23, %s1235_s23, %s1236_s24  }
  0x11   : > { %p86_p11 = scmp.eq.s32.totalorder %s1281_s19, 1  ;;  %p37_p12 = por %p36_p9, %p35_p7 }
  0x12   : > { %s1309_s29 = scalar_select %p26_p8, %s1228_s14, %s28_s27  }
  0x13   : > { %p1313_p13 = por %p42_p1, %p41_p10  ;;  %p1317_p0 = por %p86_p11, %p35_p7 }
  0x14   : > { %p92_p2 = scmp.eq.s32.totalorder %s783_s25, 1  ;;  %p1064_p4 = scmp.lt.s32.totalorder %s1232_s15, 2 }
  0x15   : > { %s152_s5 = sand.u32 1, %s1228_s14   ;;  %s1041_s9 = smul.u32 12, %s1232_s15 }
  0x16   : > { %p1323_p6 = por %p92_p2, %p41_p10  ;;  %s1040_s7 = smul.u32 12, %s152_s5 }
  0x17   : > { %p1327_p8 = pnand %p1064_p4, %p37_p12  ;;  %s161_s16 = scalar_lea.hbm %s1420_s0, %s1041_s9 }
  0x18   : > { %s156_s17 = scalar_lea.vmem [#allocation2], %s1040_s7  ;;  %s163_s21 = sshll.u32 %s161_s16, 4  ;;  %s164_s21 = int_to_ptr.hbm [resolvable:$true] %s163_s21 }
  0x19   : > { %s165_s18 = sshll.u32 %s156_s17, 4  ;;  %s153_s22 = scalar_lea.sflag [#allocation3], %s152_s5  ;;  %s166_s18 = int_to_ptr.vmem [resolvable:$true] %s165_s18 }
  0x1a   : > { %s1132_s23 = sshra.s32 %s164_s21, 4  ;;  %p1136_p9 = pneg %p1327_p8  ;;  %s1133_s23 = int_to_ptr.hbm [resolvable:$true] %s1132_s23 }
  0x1b   : > { %s1134_s24 = scalar_lea.hbm %s1133_s23, 12  ;;  %s1139_s28 = scalar_lea.hbm %s1420_s0, 24 }
  0x1c   : > { %p1135_p7 = scmp.ne.s32.totalorder %s1133_s23, %s1134_s24  ;;  %p1140_p12 = scmp.lt.s32.totalorder %s1133_s23, %s1420_s0 }
  0x1d   : > { %p1141_p2 = scmp.lt.s32.totalorder %s1139_s28, %s1134_s24 }
  0x1e   : > { %p1137_p10 = pnand %p1136_p9, %p1135_p7 }
  0x1f   : > { %p1142_p4 = por %p1141_p2, %p1140_p12 }
  0x20   : > { %p1138_p11 = pneg %p1137_p10 }
  0x22   : > { %p1143_p5 = pnand %p1142_p4, %p1138_p11 }
  0x24   : > { %1146 = shalt.err (!%p1143_p5)
}
  0x25   : > { %1058 = dma.hbm_to_vmem [thread:$0]  (!%p1327_p8), %s164_s21, 192, %s166_s18, %s153_s22  }
  0x26   : > { %174 = sbr.rel (%p1286_p3) target bundleno = 280 (0x118), region = 28  ;;  %s1348_s5 = sand.u32 (!%p1286_p3), 1, %s1224_s13  }
  0x27   : > { %s1042_s7 = smul.u32 (!%p1286_p3), 12, %s1348_s5  ;;  %s177_s11 = scalar_lea.sflag (!%p1286_p3), [#allocation3], %s1348_s5 }
  0x29   : > { %s1352_s16 = scalar_lea.vmem (!%p1286_p3), [#allocation2], %s1042_s7 }
  0x2b   : > { %1207 = dma.done.wait (%p1313_p13), %s177_s11, 192  }
  0x2c   : > { %1209 = vsyncadd (%p1313_p13), %s177_s11, 4294967104 }
  0x2d   : > { %1211 = dma.done.wait (%p42_p1), [#allocation6], 6144  }
  0x2e   : > { %1213 = vsyncadd (%p42_p1), [#allocation6], 4294961152  ;;  %v851_v0 = vld [vmem:[#allocation5 + $0x70] sm:$0xf]  ;;  %v1006_v1 = vld [vmem:[#allocation5 + $0x74] sm:$0xf0] }
  0x2f   : > { %v915_v2 = vld [vmem:[#allocation5 + $0xf0] sm:$0xf]  ;;  %v852_v3 = vor.u32 %v1006_v1, %v851_v0  ;;  %v1022_v4 = vld [vmem:[#allocation5 + $0xf4] sm:$0xf0]  ;;  %v843_v9 = vld [vmem:[#allocation5 + $0x60] sm:$0xf] }
  0x30   : > { %v979_v5 = vld [vmem:[#allocation5 + $0x170] sm:$0xf]  ;;  %v1038_v6 = vld [vmem:[#allocation5 + $0x174] sm:$0xf0]  ;;  %v916_v7 = vor.u32 %v1022_v4, %v915_v2  ;;  %v1004_v10 = vld [vmem:[#allocation5 + $0x64] sm:$0xf0] }
  0x31   : > { %v980_v8 = vor.u32 %v1038_v6, %v979_v5  ;;  %v907_v11 = vld [vmem:[#allocation5 + $0xe0] sm:$0xf]  ;;  %520 = vmatpush.bf16.msra.mxu0 %v852_v3  ;;  %v844_v12 = vor.u32 %v1004_v10, %v843_v9  ;;  %v1020_v13 = vld [vmem:[#allocation5 + $0xe4] sm:$0xf0]  ;;  %v835_v18 = vld [vmem:[#allocation5 + $0x50] sm:$0xf] }
  0x32   : > { %v971_v14 = vld [vmem:[#allocation5 + $0x160] sm:$0xf]  ;;  %v1036_v15 = vld [vmem:[#allocation5 + $0x164] sm:$0xf0]  ;;  %533 = vmatpush.bf16.msra.mxu1 %v916_v7  ;;  %v908_v16 = vor.u32 %v1020_v13, %v907_v11  ;;  %v1002_v19 = vld [vmem:[#allocation5 + $0x54] sm:$0xf0] }
  0x33   : > { %546 = vmatpush.bf16.msra.mxu2 %v980_v8  ;;  %v972_v17 = vor.u32 %v1036_v15, %v971_v14  ;;  %v899_v20 = vld [vmem:[#allocation5 + $0xd0] sm:$0xf]  ;;  %v1018_v21 = vld [vmem:[#allocation5 + $0xd4] sm:$0xf0]  ;;  %v836_v24 = vor.u32 %v1002_v19, %v835_v18  ;;  %v827_v25 = vld [vmem:[#allocation5 + $0x40] sm:$0xf] }
  0x34   : > { %v963_v22 = vld [vmem:[#allocation5 + $0x150] sm:$0xf]  ;;  %v1034_v23 = vld [vmem:[#allocation5 + $0x154] sm:$0xf0]  ;;  %v1000_v26 = vld [vmem:[#allocation5 + $0x44] sm:$0xf0]  ;;  %v900_v27 = vor.u32 %v1018_v21, %v899_v20 }
  0x35   : > { %521 = vmatpush.bf16.msra.mxu0 %v844_v12  ;;  %v964_v28 = vor.u32 %v1034_v23, %v963_v22  ;;  %v891_v29 = vld [vmem:[#allocation5 + $0xc0] sm:$0xf]  ;;  %v1005_v30 = vld [vmem:[#allocation5 + $0x74] sm:$0xf]  ;;  %v853_v31 = vld [vmem:[#allocation5 + $0x78] sm:$0xf0]  ;;  %v828_v37 = vor.u32 %v1000_v26, %v827_v25 }
  0x36   : > { %534 = vmatpush.bf16.msra.mxu1 %v908_v16  ;;  %v1016_v32 = vld [vmem:[#allocation5 + $0xc4] sm:$0xf0]  ;;  %v955_v33 = vld [vmem:[#allocation5 + $0x140] sm:$0xf]  ;;  %v856_v35 = vor.u32 %v1005_v30, %v853_v31  ;;  %v1003_v36 = vld [vmem:[#allocation5 + $0x64] sm:$0xf] }
  0x37   : > { %547 = vmatpush.bf16.msra.mxu2 %v972_v17  ;;  %v1032_v34 = vld [vmem:[#allocation5 + $0x144] sm:$0xf0]  ;;  %v819_v38 = vld [vmem:[#allocation5 + $0x30] sm:$0xf]  ;;  %v998_v39 = vld [vmem:[#allocation5 + $0x34] sm:$0xf0]  ;;  %v892_v41 = vor.u32 %v1016_v32, %v891_v29 }
  0x38   : > { %559 = vmatpush.bf16.msra.mxu3 %v856_v35  ;;  %v845_v40 = vld [vmem:[#allocation5 + $0x68] sm:$0xf0]  ;;  %v956_v42 = vor.u32 %v1032_v34, %v955_v33  ;;  %v883_v43 = vld [vmem:[#allocation5 + $0xb0] sm:$0xf]  ;;  %v1014_v44 = vld [vmem:[#allocation5 + $0xb4] sm:$0xf0]  ;;  %v820_v50 = vor.u32 %v998_v39, %v819_v38 }
  0x39   : > { %522 = vmatpush.bf16.msra.mxu0 %v836_v24  ;;  %v947_v45 = vld [vmem:[#allocation5 + $0x130] sm:$0xf]  ;;  %v848_v46 = vor.u32 %v1003_v36, %v845_v40  ;;  %v1030_v47 = vld [vmem:[#allocation5 + $0x134] sm:$0xf0]  ;;  %v1001_v48 = vld [vmem:[#allocation5 + $0x54] sm:$0xf]  ;;  %v884_v54 = vor.u32 %v1014_v44, %v883_v43 }
  0x3a   : > { %535 = vmatpush.bf16.msra.mxu1 %v900_v27  ;;  %v837_v49 = vld [vmem:[#allocation5 + $0x58] sm:$0xf0]  ;;  %v811_v51 = vld [vmem:[#allocation5 + $0x20] sm:$0xf]  ;;  %v996_v52 = vld [vmem:[#allocation5 + $0x24] sm:$0xf0]  ;;  %v948_v55 = vor.u32 %v1030_v47, %v947_v45 }
  0x3b   : > { %548 = vmatpush.bf16.msra.mxu2 %v964_v28  ;;  %v840_v53 = vor.u32 %v1001_v48, %v837_v49  ;;  %v875_v56 = vld [vmem:[#allocation5 + $0xa0] sm:$0xf]  ;;  %v999_v57 = vld [vmem:[#allocation5 + $0x44] sm:$0xf]  ;;  %v829_v58 = vld [vmem:[#allocation5 + $0x48] sm:$0xf0]  ;;  %v812_v62 = vor.u32 %v996_v52, %v811_v51 }
  0x3c   : > { %560 = vmatpush.bf16.msra.mxu3 %v848_v46  ;;  %v1012_v59 = vld [vmem:[#allocation5 + $0xa4] sm:$0xf0]  ;;  %v939_v60 = vld [vmem:[#allocation5 + $0x120] sm:$0xf]  ;;  %v803_v63 = vld [vmem:[#allocation5 + $0x10] sm:$0xf]  ;;  %v832_v1 = vor.u32 %v999_v57, %v829_v58 }
  0x3d   : > { %523 = vmatpush.bf16.msra.mxu0 %v828_v37  ;;  %v1028_v61 = vld [vmem:[#allocation5 + $0x124] sm:$0xf0]  ;;  %v994_v0 = vld [vmem:[#allocation5 + $0x14] sm:$0xf0]  ;;  %v876_v2 = vor.u32 %v1012_v59, %v875_v56  ;;  %v867_v4 = vld [vmem:[#allocation5 + $0x90] sm:$0xf] }
  0x3e   : > { %536 = vmatpush.bf16.msra.mxu1 %v892_v41  ;;  %v940_v3 = vor.u32 %v1028_v61, %v939_v60  ;;  %v997_v5 = vld [vmem:[#allocation5 + $0x34] sm:$0xf]  ;;  %v821_v6 = vld [vmem:[#allocation5 + $0x38] sm:$0xf0]  ;;  %v1010_v7 = vld [vmem:[#allocation5 + $0x94] sm:$0xf0]  ;;  %v804_v12 = vor.u32 %v994_v0, %v803_v63 }
  0x3f   : > { %549 = vmatpush.bf16.msra.mxu2 %v956_v42  ;;  %v931_v8 = vld [vmem:[#allocation5 + $0x110] sm:$0xf]  ;;  %v1026_v9 = vld [vmem:[#allocation5 + $0x114] sm:$0xf0]  ;;  %v795_v10 = vld [vmem:[#allocation5] sm:$0xf]  ;;  %v824_v15 = vor.u32 %v997_v5, %v821_v6  ;;  %v868_v17 = vor.u32 %v1010_v7, %v867_v4 }
  0x40   : > { %561 = vmatpush.bf16.msra.mxu3 %v840_v53  ;;  %v992_v11 = vld [vmem:[#allocation5 + $0x4] sm:$0xf0]  ;;  %v859_v13 = vld [vmem:[#allocation5 + $0x80] sm:$0xf]  ;;  %v932_v18 = vor.u32 %v1026_v9, %v931_v8  ;;  %v220_v19 = vld [vmem:[%s1352_s16 + $0x8] sm:$0xf] }
  0x41   : > { %524 = vmatpush.bf16.msra.mxu0 %v820_v50  ;;  %v1008_v14 = vld [vmem:[#allocation5 + $0x84] sm:$0xf0]  ;;  %v995_v20 = vld [vmem:[#allocation5 + $0x24] sm:$0xf]  ;;  %v813_v21 = vld [vmem:[#allocation5 + $0x28] sm:$0xf0]  ;;  %v796_v29 = vor.u32 %v992_v11, %v795_v10  ;;  %v273_v30 = vunpack.c.l.b16 %v220_v19 }
  0x42   : > { %537 = vmatpush.bf16.msra.mxu1 %v884_v54  ;;  %v219_v16 = vld [vmem:[%s1352_s16] sm:$0xff]  ;;  %v923_v22 = vld [vmem:[#allocation5 + $0x100] sm:$0xf]  ;;  %v917_v25 = vld [vmem:[#allocation5 + $0xf8] sm:$0xf0]  ;;  %v816_v32 = vor.u32 %v995_v20, %v813_v21  ;;  %v860_v33 = vor.u32 %v1008_v14, %v859_v13  ;;  %s1039_s20 = sshll.u32 %s1281_s19, 3 }
  0x43   : > { %550 = vmatpush.bf16.msra.mxu2 %v948_v55  ;;  %v1024_v23 = vld [vmem:[#allocation5 + $0x104] sm:$0xf0]  ;;  %v1021_v24 = vld [vmem:[#allocation5 + $0xf4] sm:$0xf]  ;;  %v981_v27 = vld [vmem:[#allocation5 + $0x178] sm:$0xf0]  ;;  %v271_v28 = vunpack.c.l.b16 %v219_v16  ;;  %v272_v31 = vunpack.c.h.b16 %v219_v16  ;;  %v1364_v44 = vpack.c.b16 %v273_v30, %v273_v30  ;;  %s670_s18 = scalar_lea.hbm %s1422_s2, %s1039_s20 }
  0x44   : > { %562 = vmatpush.bf16.msra.mxu3 %v832_v1  ;;  %v1037_v26 = vld [vmem:[#allocation5 + $0x174] sm:$0xf]  ;;  %v924_v34 = vor.u32 %v1024_v23, %v923_v22  ;;  %v920_v35 = vor.u32 %v1021_v24, %v917_v25  ;;  %v1019_v37 = vld [vmem:[#allocation5 + $0xe4] sm:$0xf]  ;;  %v805_v39 = vld [vmem:[#allocation5 + $0x18] sm:$0xf0] }
  0x45   : > { %525 = vmatpush.bf16.msra.mxu0 %v812_v62  ;;  %v984_v36 = vor.u32 %v1037_v26, %v981_v27  ;;  %v993_v38 = vld [vmem:[#allocation5 + $0x14] sm:$0xf]  ;;  %v909_v40 = vld [vmem:[#allocation5 + $0xe8] sm:$0xf0]  ;;  %v1035_v41 = vld [vmem:[#allocation5 + $0x164] sm:$0xf]  ;;  %v274_v43 = vpack.c.b16 %v271_v28, %v271_v28  ;;  %v1366_v45 = vpack.c.b16 %v272_v31, %v272_v31 }
  0x46   : > { %538 = vmatpush.bf16.msra.mxu1 %v876_v2  ;;  %v973_v42 = vld [vmem:[#allocation5 + $0x168] sm:$0xf0]  ;;  %v808_v46 = vor.u32 %v993_v38, %v805_v39  ;;  %v912_v47 = vor.u32 %v1019_v37, %v909_v40  ;;  %v1017_v49 = vld [vmem:[#allocation5 + $0xd4] sm:$0xf]  ;;  %v991_v50 = vld [vmem:[#allocation5 + $0x4] sm:$0xf] }
  0x47   : > { %551 = vmatpush.bf16.msra.mxu2 %v940_v3  ;;  %v976_v48 = vor.u32 %v1035_v41, %v973_v42  ;;  %v797_v51 = vld [vmem:[#allocation5 + $0x8] sm:$0xf0]  ;;  %v901_v52 = vld [vmem:[#allocation5 + $0xd8] sm:$0xf0]  ;;  %v1033_v53 = vld [vmem:[#allocation5 + $0x154] sm:$0xf] }
  0x48   : > { %563 = vmatpush.bf16.msra.mxu3 %v824_v15  ;;  %v965_v54 = vld [vmem:[#allocation5 + $0x158] sm:$0xf0]  ;;  %v800_v55 = vor.u32 %v991_v50, %v797_v51  ;;  %v904_v56 = vor.u32 %v1017_v49, %v901_v52  ;;  %v1015_v58 = vld [vmem:[#allocation5 + $0xc4] sm:$0xf]  ;;  %v893_v59 = vld [vmem:[#allocation5 + $0xc8] sm:$0xf0] }
  0x49   : > { %526 = vmatpush.bf16.msra.mxu0 %v804_v12  ;;  %v968_v57 = vor.u32 %v1033_v53, %v965_v54  ;;  %v1031_v60 = vld [vmem:[#allocation5 + $0x144] sm:$0xf]  ;;  %v957_v61 = vld [vmem:[#allocation5 + $0x148] sm:$0xf0]  ;;  %v896_v62 = vor.u32 %v1015_v58, %v893_v59  ;;  %v1013_v0 = vld [vmem:[#allocation5 + $0xb4] sm:$0xf] }
  0x4a   : > { %539 = vmatpush.bf16.msra.mxu1 %v868_v17  ;;  %v960_v63 = vor.u32 %v1031_v60, %v957_v61  ;;  %v885_v1 = vld [vmem:[#allocation5 + $0xb8] sm:$0xf0]  ;;  %v1029_v2 = vld [vmem:[#allocation5 + $0x134] sm:$0xf]  ;;  %v1011_v6 = vld [vmem:[#allocation5 + $0xa4] sm:$0xf] }
  0x4b   : > { %552 = vmatpush.bf16.msra.mxu2 %v932_v18  ;;  %v949_v3 = vld [vmem:[#allocation5 + $0x138] sm:$0xf0]  ;;  %v888_v4 = vor.u32 %v1013_v0, %v885_v1  ;;  %v877_v7 = vld [vmem:[#allocation5 + $0xa8] sm:$0xf0]  ;;  %v1027_v8 = vld [vmem:[#allocation5 + $0x124] sm:$0xf] }
  0x4c   : > { %564 = vmatpush.bf16.msra.mxu3 %v816_v32  ;;  %v952_v5 = vor.u32 %v1029_v2, %v949_v3  ;;  %v941_v9 = vld [vmem:[#allocation5 + $0x128] sm:$0xf0]  ;;  %v880_v10 = vor.u32 %v1011_v6, %v877_v7  ;;  %v1009_v12 = vld [vmem:[#allocation5 + $0x94] sm:$0xf]  ;;  %v869_v13 = vld [vmem:[#allocation5 + $0x98] sm:$0xf0] }
  0x4d   : > { %527 = vmatpush.bf16.msra.mxu0 %v796_v29  ;;  %v944_v11 = vor.u32 %v1027_v8, %v941_v9  ;;  %v1025_v14 = vld [vmem:[#allocation5 + $0x114] sm:$0xf]  ;;  %v933_v15 = vld [vmem:[#allocation5 + $0x118] sm:$0xf0]  ;;  %v872_v16 = vor.u32 %v1009_v12, %v869_v13  ;;  %v1007_v18 = vld [vmem:[#allocation5 + $0x84] sm:$0xf] }
  0x4e   : > { %540 = vmatpush.bf16.msra.mxu1 %v860_v33  ;;  %v936_v17 = vor.u32 %v1025_v14, %v933_v15  ;;  %v861_v19 = vld [vmem:[#allocation5 + $0x88] sm:$0xf0]  ;;  %v1023_v20 = vld [vmem:[#allocation5 + $0x104] sm:$0xf]  ;;  %s790_s30 = sshll.u32 %s1348_s5, 3  ;;  %s674_s23 = sshll.u32 %s670_s18, 4  ;;  %s675_s23 = int_to_ptr.hbm [resolvable:$true] %s674_s23 }
  0x4f   : > { %553 = vmatpush.bf16.msra.mxu2 %v924_v34  ;;  %v925_v21 = vld [vmem:[#allocation5 + $0x108] sm:$0xf0]  ;;  %v864_v22 = vor.u32 %v1007_v18, %v861_v19  ;;  %s206_s21 = scalar_lea.vmem [#allocation7], %s790_s30  ;;  %s654_s24 = scalar_lea.sflag [#allocation4], %s1348_s5 }
  0x50   : > { %528 = vmatmul.bf16.vlgmr.msra.gmra.mxu0 %v274_v43  ;;  %565 = vmatpush.bf16.msra.mxu3 %v808_v46  ;;  %v928_v23 = vor.u32 %v1023_v20, %v925_v21  ;;  %s672_s22 = sshll.u32 %s206_s21, 4  ;;  %s1176_s25 = sshra.s32 %s675_s23, 4  ;;  %s673_s22 = int_to_ptr.vmem [resolvable:$true] %s672_s22  ;;  %s1177_s25 = int_to_ptr.hbm [resolvable:$true] %s1176_s25 }
  0x51   : > { %572 = vmatpush.bf16.msrb.mxu0 %v920_v35  ;;  %541 = vmatmul.bf16.vlgmr.msra.gmra.mxu1 %v1366_v45  ;;  %s1178_s27 = scalar_lea.hbm %s1177_s25, 8  ;;  %s1182_s9 = scalar_lea.hbm %s1422_s2, 16 }
  0x52   : > { %585 = vmatpush.bf16.msrb.mxu1 %v984_v36  ;;  %554 = vmatmul.bf16.vlgmr.msra.gmra.mxu2 %v1364_v44  ;;  %p1179_p1 = scmp.ne.s32.totalorder %s1177_s25, %s1178_s27  ;;  %p1183_p13 = scmp.lt.s32.totalorder %s1177_s25, %s1422_s2 }
  0x53   : > { %p1184_p8 = scmp.lt.s32.totalorder %s1182_s9, %s1178_s27 }
  0x54   : > { %566 = vmatpush.bf16.msra.mxu3 %v800_v55  ;;  %p1180_p3 = pnand %p1179_p1, %p1317_p0 }
  0x55   : > { %573 = vmatpush.bf16.msrb.mxu0 %v912_v47  ;;  %p1185_p7 = por %p1184_p8, %p1183_p13 }
  0x56   : > { %586 = vmatpush.bf16.msrb.mxu1 %v976_v48  ;;  %p1181_p5 = pneg %p1180_p3 }
  0x57   : > { %567 = vmatmul.bf16.vlgmr.msra.gmra.mxu3 %v274_v43 }
  0x58   : > { %p1186_p9 = pnand %p1185_p7, %p1181_p5 }
  0x59   : > { %574 = vmatpush.bf16.msrb.mxu0 %v904_v56 }
  0x5a   : > { %587 = vmatpush.bf16.msrb.mxu1 %v968_v57 }
  0x5d   : > { %575 = vmatpush.bf16.msrb.mxu0 %v896_v62 }
  0x5e   : > { %588 = vmatpush.bf16.msrb.mxu1 %v960_v63 }
  0x61   : > { %576 = vmatpush.bf16.msrb.mxu0 %v888_v4 }
  0x62   : > { %589 = vmatpush.bf16.msrb.mxu1 %v952_v5 }
  0x65   : > { %577 = vmatpush.bf16.msrb.mxu0 %v880_v10 }
  0x66   : > { %590 = vmatpush.bf16.msrb.mxu1 %v944_v11 }
  0x69   : > { %578 = vmatpush.bf16.msrb.mxu0 %v872_v16 }
  0x6a   : > { %591 = vmatpush.bf16.msrb.mxu1 %v936_v17 }
  0x6d   : > { %579 = vmatpush.bf16.msrb.mxu0 %v864_v22 }
  0x6e   : > { %592 = vmatpush.bf16.msrb.mxu1 %v928_v23 }
  0x70   : > { %580 = vmatmul.bf16.vlgmr.msrb.gmra.mxu0 %v1366_v45 }
  0x71   : > { %593 = vmatmul.bf16.vlgmr.msrb.gmra.mxu1 %v1364_v44 }
  0xcd   : > { %v529_v24 = vpop.f32.mrf.mxu0 }
  0xce   : > { %v542_v25 = vpop.f32.mrf.mxu1 }
  0xcf   : > { %v543_v26 = vadd.f32 %v542_v25, %v529_v24 }
  0xd5   : > { %v555_v27 = vpop.f32.mrf.mxu2  ;;  %v531_v29 = vpop.f32.mrf.mxu0 }
  0xd6   : > { %v556_v28 = vadd.f32 %v555_v27, %v543_v26  ;;  %v544_v30 = vpop.f32.mrf.mxu1 }
  0xd8   : > { %v600_v31 = vrot.slane %v556_v28, 4 }
  0xda   : > { %v601_v32 = vadd.f32 %v600_v31, %v556_v28  ;;  %v568_v34 = vpop.f32.mrf.mxu3 }
  0xdc   : > { %v602_v33 = vrot.slane %v601_v32, 2 }
  0xdd   : > { %v557_v35 = vpop.f32.mrf.mxu2 }
  0xde   : > { %v603_v36 = vadd.f32 %v602_v33, %v601_v32 }
  0xe0   : > { %v604_v37 = vrot.slane %v603_v36, 1 }
  0xe2   : > { %v570_v38 = vpop.f32.mrf.mxu3  ;;  %v1372_v39 = vadd.f32 %v604_v37, %v603_v36 }
  0xe4   : > { %v1377_v40 = vmul.f32 0.125, %v1372_v39 }
  0xe6   : > { %v614_v44 = vsub.f32 %v556_v28, %v1377_v40 }
  0xe8   : > { %v618_v48 = vmul.f32 %v614_v44, %v614_v44 }
  0xed   : > { %v581_v41 = vpop.f32.mrf.mxu0 }
  0xee   : > { %v594_v42 = vpop.f32.mrf.mxu1  ;;  %v582_v43 = vadd.f32 %v581_v41, %v568_v34 }
  0xf0   : > { %v595_v45 = vadd.f32 %v594_v42, %v582_v43 }
  0xf2   : > { %v598_v46 = vpack.c.bf16 %v595_v45, %v556_v28  ;;  %v606_v47 = vrot.slane %v595_v45, 4 }
  0xf4   : > { %v607_v49 = vadd.f32 %v606_v47, %v595_v45  ;;  %599 = vst [vmem:[%s206_s21] sm:$0xff] %v598_v46 }
  0xf5   : > { %v583_v50 = vpop.f32.mrf.mxu0 }
  0xf6   : > { %v596_v51 = vpop.f32.mrf.mxu1 }
  0xf7   : > { %1189 = shalt.err (!%p1186_p9)
}
  0xf8   : > { %1049 = dma.vmem_to_hbm [thread:$0]  (%p1317_p0), %s673_s22, 128, %s675_s23, %s654_s24   ;;  %v608_v52 = vrot.slane %v607_v49, 2  ;;  %v620_v53 = vrot.slane %v618_v48, 4  ;;  %v634_v7 = vmul.f32 8.0, %v1377_v40  ;;  %vm640_vm0 = vcmask 1040384  }
  0xf9   : > { %p214_p10 = scmp.lt.s32.totalorder %s1281_s19, 1  ;;  %vm643_vm1 = vcmask 1041408   ;;  %vm649_vm2 = vcmask 1043456  }
  0xfa   : > { %v609_v54 = vadd.f32 %v608_v52, %v607_v49  ;;  %v621_v56 = vadd.f32 %v620_v53, %v618_v48  ;;  %v636_v12 = vmul.f32 %v634_v7, %v1377_v40 }
  0xfb   : > { %s1435_s19 = smov (!%p214_p10, %s1281_s19), 1 }
  0xfc   : > { %v610_v55 = vrot.slane %v609_v54, 1  ;;  %v622_v59 = vrot.slane %v621_v56, 2  ;;  %s990_s4 = sshll.u32 %s1435_s19, 3 }
  0xfd   : > { %s218_s20 = scalar_lea.vmem %s1423_s3, %s990_s4 }
  0xfe   : > { %v611_v57 = vadd.f32 %v610_v55, %v609_v54  ;;  %v623_v62 = vadd.f32 %v622_v59, %v621_v56 }
 0x100   : > { %v613_v58 = vmul.f32 0.125, %v611_v57  ;;  %v624_v1 = vrot.slane %v623_v62, 1 }
 0x102   : > { %v615_v60 = vsub.f32 %v595_v45, %v613_v58  ;;  %v635_v4 = vmul.f32 8.0, %v613_v58  ;;  %v625_v5 = vadd.f32 %v624_v1, %v623_v62 }
 0x104   : > { %v619_v61 = vmul.f32 %v615_v60, %v615_v60  ;;  %v637_v9 = vmul.f32 %v635_v4, %v613_v58  ;;  %v641_v10 = vsel %vm640_vm0, %v1372_v39, %v625_v5 }
 0x105   : > { %v644_v15 = vsel %vm643_vm1, %v641_v10, %v636_v12 }
 0x106   : > { %v626_v63 = vrot.slane %v619_v61, 4 }
 0x108   : > { %v627_v0 = vadd.f32 %v626_v63, %v619_v61 }
 0x10a   : > { %v628_v2 = vrot.slane %v627_v0, 2 }
 0x10c   : > { %v629_v3 = vadd.f32 %v628_v2, %v627_v0 }
 0x10e   : > { %v630_v6 = vrot.slane %v629_v3, 1 }
 0x110   : > { %v631_v8 = vadd.f32 %v630_v6, %v629_v3 }
 0x112   : > { %v642_v11 = vsel %vm640_vm0, %v611_v57, %v631_v8 }
 0x113   : > { %v645_v13 = vsel %vm643_vm1, %v642_v11, %v637_v9 }
 0x114   : > { %v648_v14 = vrot.slane %v645_v13, 4 }
 0x116   : > { %v650_v16 = vsel %vm649_vm2, %v644_v15, %v648_v14 }
 0x117   : > { %652 = vst [vmem:[%s218_s20] sm:$0x77] %v650_v16 }
 0x118 PF: > { %s689_s19 = sand.u32 1, %s1220_s12   ;;  %p1429_p0 = scmp.ge.s32.totalorder %s1232_s15, 2 }
 0x119   : > { %s690_s30 = scalar_lea.sflag [#allocation4], %s689_s19 }
 0x11a   : > { %p1060_p11 = pnand %p1429_p0, %p1323_p6 }
 0x11c   : > { %p1061_p12 = pneg %p1060_p11 }
 0x11e   : > { %1215 = dma.done.wait (%p1061_p12), %s690_s30, 128  }
 0x11f   : > { %1217 = vsyncadd (%p1061_p12), %s690_s30, 4294967168  ;;  %p18_p2 = scmp.ge.s32.totalorder %s1297_s26, 4   ;;  %s1430_s12 = smov %s1224_s13 }
 0x120   : > { %s1431_s13 = smov %s1228_s14  ;;  %s1432_s14 = smov %s1309_s29 }
 0x121   : > { %s1433_s15 = smov %s1297_s26  ;;  %20 = sbr.rel (!%p18_p2) target bundleno = 6 (0x6), region = 89 }
 0x126   :  { %704 = vsyncpa [#allocation3], 1 }
 0x127   :  { %706 = vsyncpa [#allocation3 + $0x1], 1 }
 0x128   :  { %707 = vsyncpa [#allocation6], 1 }
 0x129   :  { %708 = vsyncpa [#allocation4], 1 }
 0x12a   :  { %710 = vsyncpa [#allocation4 + $0x1], 1 }

</bundles_post_ra>
